<compile_context>
chip_gen: v7x
topology: tpu7x:2x2x1
jax: 0.10.0
libtpu: 0.0.40
codegen_flags: <defaults>
</compile_context>

<pallas_src>
import functools
import math

import jax
import jax.numpy as jnp
from jax import lax
from jax.experimental import pallas as pl
from jax.experimental.pallas import tpu as pltpu


def _round_up(x, m):
    return ((x + m - 1) // m) * m


def _circle_kernel(feat_ref, w_ref, tgt_ref, out_ref, *, s, m, mxu_dtype):
    # feat_ref: (TN, Dp)   w_ref: (TC, Dp)   tgt_ref: (TN, 1) i32
    # out_ref:  (TN, TC)
    f = feat_ref[...].astype(jnp.float32)
    w = w_ref[...].astype(jnp.float32)

    # F.normalize default eps = 1e-12; rsqrt(max(|x|^2, eps^2)) == 1/max(|x|,eps).
    eps2 = jnp.float32(1e-24)
    f_n = f * lax.rsqrt(jnp.maximum(jnp.sum(f * f, axis=-1, keepdims=True), eps2))
    w_n = w * lax.rsqrt(jnp.maximum(jnp.sum(w * w, axis=-1, keepdims=True), eps2))

    if mxu_dtype is not None:             # optional bf16 MXU path (v6e/v7x)
        f_n = f_n.astype(mxu_dtype)
        w_n = w_n.astype(mxu_dtype)

    # Cosine similarity (TN, TC): contract D of both operands, no transpose.
    sim = lax.dot_general(f_n, w_n, (((1,), (1,)), ((), ())),
                          preferred_element_type=jnp.float32)

    alpha_p = jnp.maximum(-sim + (1.0 + m), 0.0)   # relu(-sim + 1 + m)
    alpha_n = jnp.maximum(sim + m, 0.0)            # relu(sim + m)
    s_p = s * alpha_p * (sim - (1.0 - m))
    s_n = s * alpha_n * (sim - m)

    tn, tc = out_ref.shape
    col = (lax.broadcasted_iota(jnp.int32, (tn, tc), dimension=1)
           + pl.program_id(1) * tc)
    tgt = tgt_ref[...]                             # (TN, 1) int32, broadcasts
    out_ref[...] = jnp.where(col == tgt, s_p, s_n).astype(out_ref.dtype)


def circle_forward(features, weight, targets, *, s=128.0, m=0.25,
                   tn=256, tc=1024, out_dtype=jnp.float32, mxu_dtype=None):
    """features: (N, D), weight: (C, D) [torch.nn.Linear layout], targets: (N,)."""
    n, d = features.shape
    c, d2 = weight.shape
    assert d == d2

    # Lane-dense padding: D and C up to multiples of 128.
    dp = _round_up(d, 128)
    cp = _round_up(c, 128)

    # Batch tile: sublane-aligned, clamped to the (padded) batch.
    tn = max(8, min(int(tn), _round_up(n, 8)))
    tn = _round_up(tn, 8)
    # Class tile: lane-aligned, clamped to the padded class count.
    tc = max(128, min(int(tc), cp))
    tc = _round_up(tc, 128)
    while cp % tc != 0:                 # keep the class grid exact
        tc -= 128

    # VMEM budget conservative for v7x (64 MiB physical, 32 MiB scoped default).
    def vmem_bytes(t_n, t_c):
        return (2 * t_n * dp * 4        # features tile (double-buffered)
                + 2 * t_c * dp * 4      # weight tile   (double-buffered)
                + 2 * t_n * t_c * 4     # output tile
                + 2 * t_n * 128 * 4)    # targets tile (lane-padded)

    budget = 40 << 20
    while vmem_bytes(tn, tc) > budget and (tn > 64 or tc > 128):
        if tn >= tc and tn > 64:
            tn = _round_up(tn // 2, 8)
        elif tc > 128:
            tc = _round_up(tc // 2, 128)
            while cp % tc != 0:
                tc -= 128
        else:
            tn = _round_up(tn // 2, 8)
    vmem_limit = int(min(max(vmem_bytes(tn, tc) + (8 << 20), 32 << 20), 60 << 20))

    n_pad = _round_up(n, tn)

    # Zero-pad: padded weight rows / feature rows normalize to ~0 and padded
    # columns are sliced off below; targets never index padded columns.
    feat_p = jnp.zeros((n_pad, dp), features.dtype).at[:n, :d].set(features)
    w_p = jnp.zeros((cp, dp), weight.dtype).at[:c, :d].set(weight)
    tgt_p = jnp.zeros((n_pad, 1), jnp.int32).at[:n, 0].set(
        targets.astype(jnp.int32))

    kernel = functools.partial(_circle_kernel, s=float(s), m=float(m),
                               mxu_dtype=mxu_dtype)
    out_p = pl.pallas_call(
        kernel,
        out_shape=jax.ShapeDtypeStruct((n_pad, cp), out_dtype),
        grid_spec=pltpu.PrefetchScalarGridSpec(
            num_scalar_prefetch=0,
            grid=(n_pad // tn, cp // tc),
            in_specs=[
                pl.BlockSpec((tn, dp), lambda i, j: (i, 0)),   # features tile
                pl.BlockSpec((tc, dp), lambda i, j: (j, 0)),   # weight tile
                pl.BlockSpec((tn, 1), lambda i, j: (i, 0)),    # targets tile
            ],
            out_specs=pl.BlockSpec((tn, tc), lambda i, j: (i, j)),
        ),
        compiler_params=pltpu.CompilerParams(
            dimension_semantics=("parallel", "parallel"),
            vmem_limit_bytes=vmem_limit),
    )(feat_p, w_p, tgt_p)

    return out_p[:n, :c]


def _reference(features, weight, targets, s=128.0, m=0.25):
    eps = 1e-12
    f = features / jnp.maximum(
        jnp.linalg.norm(features, axis=-1, keepdims=True), eps)
    w = weight / jnp.maximum(
        jnp.linalg.norm(weight, axis=-1, keepdims=True), eps)
    sim = f @ w.T
    alpha_p = jax.nn.relu(-sim + 1 + m)
    alpha_n = jax.nn.relu(sim + m)
    s_p = s * alpha_p * (sim - (1 - m))
    s_n = s * alpha_n * (sim - m)
    one_hot = jax.nn.one_hot(targets, weight.shape[0], dtype=sim.dtype)
    return one_hot * s_p + (1.0 - one_hot) * s_n


if __name__ == "__main__":
    key = jax.random.PRNGKey(0)
    k_feat, k_w, k_tgt = jax.random.split(key, 3)

    batch = 16
    in_features = 32
    out_features = 64

    features = jax.random.normal(k_feat, (batch, in_features), jnp.float32)

    # kaiming_uniform_(a=sqrt(5)) on (out_features, in_features):
    # bound = sqrt(6 / ((1 + a^2) * fan_in)) = 1 / sqrt(fan_in)
    bound = 1.0 / math.sqrt(in_features)
    weight = jax.random.uniform(
        k_w, (out_features, in_features), jnp.float32, -bound, bound)

    targets = jax.random.randint(k_tgt, (batch,), 0, out_features, jnp.int32)

    out = circle_forward(features, weight, targets, s=128.0, m=0.25)
    out = jax.block_until_ready(out)

    ref = _reference(features, weight, targets, s=128.0, m=0.25)
    assert out.shape == (batch, out_features)
    assert jnp.allclose(out, ref, atol=1e-4, rtol=1e-4), "mismatch vs reference"

    print("KERNEL_OK")
</pallas_src>

<mosaic_0001>
module attributes {stable_mosaic.version = 11 : i64} {
  func.func @_circle_kernel(%arg0: i32, %arg1: i32, %arg2: memref<16x128xf32, #tpu.memory_space<vmem>>, %arg3: memref<128x128xf32, #tpu.memory_space<vmem>>, %arg4: memref<16x1xi32, #tpu.memory_space<vmem>>, %arg5: memref<16x128xf32, #tpu.memory_space<vmem>>) attributes {dimension_semantics = [#tpu.dimension_semantics<parallel>, #tpu.dimension_semantics<parallel>], iteration_bounds = array<i64: 1, 1>, scalar_prefetch = 0 : i64, scratch_operands = 0 : i64, tpu.core_type = #tpu.core_type<tc>, window_params = [{transform_indices = @transform_0, window_bounds = array<i64: 16, 128>}, {transform_indices = @transform_1, window_bounds = array<i64: 128, 128>}, {transform_indices = @transform_2, window_bounds = array<i64: 16, 1>}, {transform_indices = @transform_3, window_bounds = array<i64: 16, 128>}]} {
    %c0 = arith.constant 0 : index
    %c0_0 = arith.constant 0 : index
    %0 = vector.load %arg2[%c0, %c0_0] : memref<16x128xf32, #tpu.memory_space<vmem>>, vector<16x128xf32>
    %c0_1 = arith.constant 0 : index
    %c0_2 = arith.constant 0 : index
    %1 = vector.load %arg3[%c0_1, %c0_2] : memref<128x128xf32, #tpu.memory_space<vmem>>, vector<128x128xf32>
    %2 = arith.mulf %0, %0 : vector<16x128xf32>
    %cst = arith.constant dense<0.000000e+00> : vector<16xf32>
    %3 = vector.multi_reduction <add>, %2, %cst [1] : vector<16x128xf32> to vector<16xf32>
    %4 = vector.shape_cast %3 : vector<16xf32> to vector<16x1xf32>
    %cst_3 = arith.constant 1.000000e-24 : f32
    %5 = vector.broadcast %cst_3 : f32 to vector<16x1xf32>
    %6 = arith.maximumf %4, %5 : vector<16x1xf32>
    %7 = math.rsqrt %6 : vector<16x1xf32>
    %8 = vector.broadcast %7 : vector<16x1xf32> to vector<16x128xf32>
    %9 = arith.mulf %0, %8 : vector<16x128xf32>
    %10 = arith.mulf %1, %1 : vector<128x128xf32>
    %cst_4 = arith.constant dense<0.000000e+00> : vector<128xf32>
    %11 = vector.multi_reduction <add>, %10, %cst_4 [1] : vector<128x128xf32> to vector<128xf32>
    %12 = vector.shape_cast %11 : vector<128xf32> to vector<128x1xf32>
    %cst_5 = arith.constant 1.000000e-24 : f32
    %13 = vector.broadcast %cst_5 : f32 to vector<128x1xf32>
    %14 = arith.maximumf %12, %13 : vector<128x1xf32>
    %15 = math.rsqrt %14 : vector<128x1xf32>
    %16 = vector.broadcast %15 : vector<128x1xf32> to vector<128x128xf32>
    %17 = arith.mulf %1, %16 : vector<128x128xf32>
    %cst_6 = arith.constant dense<0.000000e+00> : vector<16x128xf32>
    %18 = tpu.matmul %9, %17, %cst_6 {dimension_numbers = #tpu.dot_dimension_numbers<[1], [1], [0], [0], [0, 0, 1, 0], [], []>} : vector<16x128xf32>, vector<128x128xf32>, vector<16x128xf32> -> vector<16x128xf32>
    %cst_7 = arith.constant 0.000000e+00 : f32
    %19 = vector.broadcast %cst_7 : f32 to vector<16x128xf32>
    %20 = arith.subf %19, %18 : vector<16x128xf32>
    %cst_8 = arith.constant 1.250000e+00 : f32
    %21 = vector.broadcast %cst_8 : f32 to vector<16x128xf32>
    %22 = arith.addf %20, %21 : vector<16x128xf32>
    %cst_9 = arith.constant 0.000000e+00 : f32
    %23 = vector.broadcast %cst_9 : f32 to vector<16x128xf32>
    %24 = arith.maximumf %22, %23 : vector<16x128xf32>
    %cst_10 = arith.constant 2.500000e-01 : f32
    %25 = vector.broadcast %cst_10 : f32 to vector<16x128xf32>
    %26 = arith.addf %18, %25 : vector<16x128xf32>
    %cst_11 = arith.constant 0.000000e+00 : f32
    %27 = vector.broadcast %cst_11 : f32 to vector<16x128xf32>
    %28 = arith.maximumf %26, %27 : vector<16x128xf32>
    %cst_12 = arith.constant 1.280000e+02 : f32
    %29 = vector.broadcast %cst_12 : f32 to vector<16x128xf32>
    %30 = arith.mulf %29, %24 : vector<16x128xf32>
    %cst_13 = arith.constant 7.500000e-01 : f32
    %31 = vector.broadcast %cst_13 : f32 to vector<16x128xf32>
    %32 = arith.subf %18, %31 : vector<16x128xf32>
    %33 = arith.mulf %30, %32 : vector<16x128xf32>
    %cst_14 = arith.constant 1.280000e+02 : f32
    %34 = vector.broadcast %cst_14 : f32 to vector<16x128xf32>
    %35 = arith.mulf %34, %28 : vector<16x128xf32>
    %cst_15 = arith.constant 2.500000e-01 : f32
    %36 = vector.broadcast %cst_15 : f32 to vector<16x128xf32>
    %37 = arith.subf %18, %36 : vector<16x128xf32>
    %38 = arith.mulf %35, %37 : vector<16x128xf32>
    %39 = tpu.iota {dimensions = array<i32: 1>} : vector<16x128xi32>
    %c128_i32 = arith.constant 128 : i32
    %40 = arith.muli %arg1, %c128_i32 : i32
    %41 = vector.broadcast %40 : i32 to vector<16x128xi32>
    %42 = arith.addi %39, %41 : vector<16x128xi32>
    %c0_16 = arith.constant 0 : index
    %c0_17 = arith.constant 0 : index
    %43 = vector.load %arg4[%c0_16, %c0_17] : memref<16x1xi32, #tpu.memory_space<vmem>>, vector<16x1xi32>
    %44 = vector.broadcast %43 : vector<16x1xi32> to vector<16x128xi32>
    %45 = arith.cmpi eq, %42, %44 : vector<16x128xi32>
    %46 = arith.select %45, %33, %38 : vector<16x128xi1>, vector<16x128xf32>
    %c0_18 = arith.constant 0 : index
    %c0_19 = arith.constant 0 : index
    %47 = vector.load %arg5[%c0_18, %c0_19] : memref<16x128xf32, #tpu.memory_space<vmem>>, vector<16x128xf32>
    tpu.vector_store %arg5[%c0_18, %c0_19], %46 {strides = array<i32>} : memref<16x128xf32, #tpu.memory_space<vmem>>, vector<16x128xf32>,
    return
  }
  func.func @transform_0(%arg0: i32, %arg1: i32) -> (i32, i32) {
    %c0_i32 = arith.constant 0 : i32
    %c0_i32_0 = arith.constant 0 : i32
    return %arg0, %c0_i32 : i32, i32
  }
  func.func @transform_1(%arg0: i32, %arg1: i32) -> (i32, i32) {
    %c0_i32 = arith.constant 0 : i32
    %c0_i32_0 = arith.constant 0 : i32
    return %arg1, %c0_i32 : i32, i32
  }
  func.func @transform_2(%arg0: i32, %arg1: i32) -> (i32, i32) {
    %c0_i32 = arith.constant 0 : i32
    %c0_i32_0 = arith.constant 0 : i32
    return %arg0, %c0_i32 : i32, i32
  }
  func.func @transform_3(%arg0: i32, %arg1: i32) -> (i32, i32) {
    %c0_i32 = arith.constant 0 : i32
    return %arg0, %arg1 : i32, i32
  }
}

</mosaic_0001>

<bundles_post_ra>
// kernel: tpu_custom_call.1
= control target key start
LH: loop header
LB: loop body
LE: loop exit
PB: predicated region body
PF: predicated region fallthrough
CT: control target
= control target key end

     0   :  { %8 = vsyncpa [#allocation3], 0  ;;  %s625_s0 = inlined_call_operand.vmem [shape: f32[16,128], index: 0, kind: input, shape index: {}]   ;;  %s626_s1 = inlined_call_operand.hbm [shape: f32[128,128], index: 1, kind: input, shape index: {}]   ;;  %s627_s2 = inlined_call_operand.vmem [shape: s32[16,1], index: 2, kind: input, shape index: {}]   ;;  %s628_s3 = inlined_call_operand.hbm [shape: f32[16,128], index: 3, kind: output, shape index: {}]  }
   0x1   :  { %9 = vsyncpa [#allocation4], 0  ;;  %s468_s12 = smov [#allocation2]   ;;  %s420_s16 = scalar_lea.hbm %s626_s1, 2048 }
   0x2   :  { %s17_s13 = sshll.u32 %s468_s12, 4  ;;  %p421_p0 = scmp.ne.s32.totalorder %s626_s1, %s420_s16  ;;  %s18_s13 = int_to_ptr.vmem [resolvable:$true] %s17_s13 }
   0x3   :  { %p424_p1 = scmp.lt.u32.totalorder %s420_s16, %s626_s1 }
   0x5   :  { %p426_p2 = pnand %p424_p1, %p421_p0 }
   0x7   :  { %429 = shalt.err (!%p426_p2)
}
   0x8   :  { %s430_s21 = scalar_lea.vmem %s18_s13, 2048  ;;  %p435_p4 = scmp.lt.s32.totalorder %s18_s13, %s18_s13 }
   0x9   :  { %p431_p3 = scmp.ne.s32.totalorder %s18_s13, %s430_s21  ;;  %p436_p5 = scmp.lt.s32.totalorder %s430_s21, %s430_s21 }
   0xb   :  { %p437_p6 = por %p436_p5, %p435_p4 }
   0xd   :  { %p438_p7 = pnand %p437_p6, %p431_p3 }
   0xf   :  { %441 = shalt.err (!%p438_p7)
}
  0x10   :  { %s469_s22 = smov 128   ;;  %s470_s23 = smov 8  }
  0x11   :  { %23 = dma.hbm_to_vmem [thread:$0]  %s626_s1, 2048, %s18_s13, [#allocation3], %s469_s22, %s469_s22, %s470_s23  }
  0x12   :  { %464 = dma.done.wait [#allocation3], 2048  }
  0x13   :  { %465 = vsyncadd [#allocation3], 4294965248  ;;  %v508_v0 = vld [vmem:[#allocation2] sm:$0xff]  ;;  %v510_v1 = vld [vmem:[#allocation2 + $0x10] sm:$0xff]  ;;  %v471_v38 = vmov 0  }
  0x14   :  { %v512_v2 = vld [vmem:[#allocation2 + $0x8] sm:$0xff]  ;;  %v59_v3 = vmul.f32 %v508_v0, %v508_v0  ;;  %v61_v4 = vmul.f32 %v510_v1, %v510_v1  ;;  %v518_v5 = vld [vmem:[#allocation2 + $0x18] sm:$0xff]  ;;  %v526_v9 = vld [vmem:[#allocation2 + $0x20] sm:$0xff]  ;;  %383 = vset.pattern.permute.xlu1 %v471_v38  ;;  %382 = vset.pattern.permute.xlu0 %v471_v38 }
  0x15   :  { %v60_v6 = vmul.f32 %v512_v2, %v512_v2  ;;  %v62_v7 = vmul.f32 %v518_v5, %v518_v5  ;;  %v524_v8 = vld [vmem:[#allocation2 + $0x28] sm:$0xff]  ;;  %v63_v11 = vmul.f32 %v526_v9, %v526_v9  ;;  %v532_v12 = vld [vmem:[#allocation2 + $0x38] sm:$0xff]  ;;  %v534_v13 = vld [vmem:[#allocation2 + $0x30] sm:$0xff] }
  0x16   :  { %75 = vadd.xlane.f32.xlu0 %v59_v3  ;;  %79 = vadd.xlane.f32.xlu1 %v61_v4  ;;  %v64_v10 = vmul.f32 %v524_v8, %v524_v8  ;;  %v66_v14 = vmul.f32 %v532_v12, %v532_v12  ;;  %v65_v15 = vmul.f32 %v534_v13, %v534_v13  ;;  %v540_v16 = vld [vmem:[#allocation2 + $0x48] sm:$0xff]  ;;  %v542_v17 = vld [vmem:[#allocation2 + $0x40] sm:$0xff]  ;;  %v548_v20 = vld [vmem:[#allocation2 + $0x58] sm:$0xff] }
  0x17   :  { %v68_v18 = vmul.f32 %v540_v16, %v540_v16  ;;  %v67_v19 = vmul.f32 %v542_v17, %v542_v17  ;;  %v550_v21 = vld [vmem:[#allocation2 + $0x50] sm:$0xff]  ;;  %v70_v22 = vmul.f32 %v548_v20, %v548_v20  ;;  %v556_v24 = vld [vmem:[#allocation2 + $0x68] sm:$0xff]  ;;  %v558_v25 = vld [vmem:[#allocation2 + $0x60] sm:$0xff] }
  0x18   :  { %v69_v23 = vmul.f32 %v550_v21, %v550_v21  ;;  %v72_v26 = vmul.f32 %v556_v24, %v556_v24  ;;  %v71_v27 = vmul.f32 %v558_v25, %v558_v25  ;;  %v564_v28 = vld [vmem:[#allocation2 + $0x78] sm:$0xff]  ;;  %v566_v29 = vld [vmem:[#allocation2 + $0x70] sm:$0xff]  ;;  %v575_v32 = vld [vmem:[%s625_s0] sm:$0xff] }
  0x19   :  { %v74_v30 = vmul.f32 %v564_v28, %v564_v28  ;;  %v73_v31 = vmul.f32 %v566_v29, %v566_v29  ;;  %v580_v33 = vld [vmem:[%s625_s0 + $0x8] sm:$0xff]  ;;  %v47_v34 = vmul.f32 %v575_v32, %v575_v32  ;;  %v257_v37 = vld [vmem:[%s627_s2] sm:$0xff]  ;;  %s472_s0 = smov [#allocation5]  }
  0x1a   :  { %77 = vadd.xlane.f32.xlu0 %v60_v6  ;;  %81 = vadd.xlane.f32.xlu1 %v62_v7  ;;  %v48_v35 = vmul.f32 %v580_v33, %v580_v33  ;;  %v258_v36 = vld [vmem:[%s627_s2 + $0x8] sm:$0xff]  ;;  %s276_s2 = sshll.u32 %s472_s0, 4  ;;  %s277_s2 = int_to_ptr.vmem [resolvable:$true] %s276_s2 }
  0x1b   :  { %s442_s6 = scalar_lea.vmem %s277_s2, 256  ;;  %p447_p9 = scmp.lt.s32.totalorder %s277_s2, %s277_s2 }
  0x1c   :  { %p443_p8 = scmp.ne.s32.totalorder %s277_s2, %s442_s6  ;;  %p448_p10 = scmp.lt.s32.totalorder %s442_s6, %s442_s6 }
  0x1e   :  { %85 = vadd.xlane.f32.xlu1 %v64_v10  ;;  %83 = vadd.xlane.f32.xlu0 %v63_v11  ;;  %p449_p11 = por %p448_p10, %p447_p9 }
  0x20   :  { %p450_p12 = pnand %p449_p11, %p443_p8 }
  0x22   :  { %89 = vadd.xlane.f32.xlu1 %v66_v14  ;;  %87 = vadd.xlane.f32.xlu0 %v65_v15 }
  0x26   :  { %93 = vadd.xlane.f32.xlu1 %v68_v18  ;;  %91 = vadd.xlane.f32.xlu0 %v67_v19 }
  0x2a   :  { %97 = vadd.xlane.f32.xlu1 %v70_v22  ;;  %95 = vadd.xlane.f32.xlu0 %v69_v23 }
  0x2e   :  { %101 = vadd.xlane.f32.xlu1 %v72_v26  ;;  %99 = vadd.xlane.f32.xlu0 %v71_v27 }
  0x32   :  { %105 = vadd.xlane.f32.xlu1 %v74_v30  ;;  %103 = vadd.xlane.f32.xlu0 %v73_v31 }
  0x36   :  { %49 = vadd.xlane.f32.xlu0 %v47_v34  ;;  %51 = vadd.xlane.f32.xlu1 %v48_v35 }
  0x47   :  { %263 = vperm.xlu1 %383, %v258_v36  }
  0x4c   :  { %260 = vperm.xlu0 %382, %v257_v37  }
  0xa3   :  { %v76_v39 = vpop.xlane.xlu0 %75  ;;  %v80_v40 = vpop.xlane.xlu1 %79 }
  0xa4   :  { %v107_v41 = vmax.f32 %v76_v39, 1e-24  ;;  %v109_v42 = vmax.f32 %v80_v40, 1e-24 }
  0xa6   :  { %384 = vrsqrt.f32 %v109_v42 }
  0xa7   :  { %v78_v43 = vpop.xlane.xlu0 %77  ;;  %v82_v44 = vpop.xlane.xlu1 %81  ;;  %386 = vrsqrt.f32 %v107_v41 }
  0xa8   :  { %v108_v45 = vmax.f32 %v78_v43, 1e-24  ;;  %v110_v46 = vmax.f32 %v82_v44, 1e-24 }
  0xaa   :  { %388 = vrsqrt.f32 %v108_v45 }
  0xab   :  { %390 = vrsqrt.f32 %v110_v46  ;;  %v86_v47 = vpop.xlane.xlu1 %85  ;;  %v84_v48 = vpop.xlane.xlu0 %83 }
  0xac   :  { %v112_v49 = vmax.f32 %v86_v47, 1e-24  ;;  %v111_v50 = vmax.f32 %v84_v48, 1e-24 }
  0xae   :  { %392 = vrsqrt.f32 %v112_v49 }
  0xaf   :  { %394 = vrsqrt.f32 %v111_v50  ;;  %v90_v51 = vpop.xlane.xlu1 %89  ;;  %v88_v52 = vpop.xlane.xlu0 %87 }
  0xb0   :  { %v385_v53 = vpop.eup %384  ;;  %v114_v54 = vmax.f32 %v90_v51, 1e-24  ;;  %v113_v56 = vmax.f32 %v88_v52, 1e-24 }
  0xb1   :  { %v387_v55 = vpop.eup %386  ;;  %v141_v59 = vmul.f32 %v385_v53, %v510_v1 }
  0xb2   :  { %v139_v61 = vmul.f32 %v387_v55, %v508_v0  ;;  %396 = vrsqrt.f32 %v114_v54 }
  0xb3   :  { %v92_v57 = vpop.xlane.xlu0 %91  ;;  %398 = vrsqrt.f32 %v113_v56  ;;  %v94_v3 = vpop.xlane.xlu1 %93 }
  0xb4   :  { %v389_v58 = vpop.eup %388  ;;  %v116_v14 = vmax.f32 %v94_v3, 1e-24  ;;  %v115_v15 = vmax.f32 %v92_v57, 1e-24 }
  0xb5   :  { %v391_v60 = vpop.eup %390  ;;  %v140_v62 = vmul.f32 %v389_v58, %v512_v2 }
  0xb6   :  { %v142_v63 = vmul.f32 %v391_v60, %v518_v5  ;;  %400 = vrsqrt.f32 %v116_v14 }
  0xb7   :  { %v345_v4 = vpack.c.bf16 %v140_v62, %v139_v61  ;;  %v96_v6 = vpop.xlane.xlu0 %95  ;;  %v98_v18 = vpop.xlane.xlu1 %97  ;;  %402 = vrsqrt.f32 %v115_v15 }
  0xb8   :  { %v393_v7 = vpop.eup %392  ;;  %v349_v10 = vpack.c.bf16 %v142_v63, %v141_v59  ;;  %v118_v26 = vmax.f32 %v98_v18, 1e-24  ;;  %v117_v27 = vmax.f32 %v96_v6, 1e-24  ;;  %v252_v59 = vlaneseq }
  0xb9   :  { %v395_v11 = vpop.eup %394  ;;  %346 = vmatprep.subr.bf16.mxu0 %v345_v4  ;;  %v144_v0 = vmul.f32 %v393_v7, %v524_v8 }
  0xba   :  { %348 = vmatpush3.bf16.xpose.msra.mxu0 %v345_v4  ;;  %v143_v1 = vmul.f32 %v395_v11, %v526_v9  ;;  %404 = vrsqrt.f32 %v118_v26  ;;  %v253_v7 = vand.u32 127, %v252_v59 }
  0xbb   :  { %350 = vmatprep.subr.bf16.mxu0 %v349_v10  ;;  %v100_v2 = vpop.xlane.xlu0 %99  ;;  %406 = vrsqrt.f32 %v117_v27  ;;  %v102_v8 = vpop.xlane.xlu1 %101 }
  0xbc   :  { %v397_v5 = vpop.eup %396  ;;  %v353_v19 = vpack.c.bf16 %v144_v0, %v143_v1  ;;  %v120_v38 = vmax.f32 %v102_v8, 1e-24  ;;  %v119_v39 = vmax.f32 %v100_v2, 1e-24 }
  0xbd   :  { %v399_v23 = vpop.eup %398  ;;  %v146_v31 = vmul.f32 %v397_v5, %v532_v12 }
  0xbe   :  { %v145_v30 = vmul.f32 %v399_v23, %v534_v13 }
  0xbf   :  { %v104_v22 = vpop.xlane.xlu0 %103  ;;  %v106_v12 = vpop.xlane.xlu1 %105 }
  0xc0   :  { %v401_v35 = vpop.eup %400  ;;  %v357_v36 = vpack.c.bf16 %v146_v31, %v145_v30  ;;  %v122_v45 = vmax.f32 %v106_v12, 1e-24  ;;  %v121_v47 = vmax.f32 %v104_v22, 1e-24 }
  0xc1   :  { %v403_v37 = vpop.eup %402  ;;  %v148_v41 = vmul.f32 %v401_v35, %v540_v16 }
  0xc2   :  { %352 = vmatpush3.bf16.xpose.msra.mxu0 %v349_v10  ;;  %v147_v40 = vmul.f32 %v403_v37, %v542_v17 }
  0xc3   :  { %354 = vmatprep.subr.bf16.mxu0 %v353_v19  ;;  %v50_v34 = vpop.xlane.xlu0 %49  ;;  %v52_v55 = vpop.xlane.xlu1 %51 }
  0xc4   :  { %v53_v9 = vmax.f32 %v50_v34, 1e-24  ;;  %v405_v13 = vpop.eup %404  ;;  %v361_v43 = vpack.c.bf16 %v148_v41, %v147_v40  ;;  %v54_v56 = vmax.f32 %v52_v55, 1e-24 }
  0xc5   :  { %v407_v42 = vpop.eup %406  ;;  %v150_v49 = vmul.f32 %v405_v13, %v548_v20 }
  0xc6   :  { %408 = vrsqrt.f32 %v53_v9  ;;  %v149_v48 = vmul.f32 %v407_v42, %v550_v21 }
  0xc7   :  { %410 = vrsqrt.f32 %v120_v38  ;;  %v264_v14 = vpop.permute.xlu1 %263 }
  0xc8   :  { %412 = vrsqrt.f32 %v119_v39  ;;  %v365_v17 = vpack.c.bf16 %v150_v49, %v149_v48  ;;  %vm266_vm0 = vcmp.eq.s32.totalorder %v253_v7, %v264_v14 }
  0xc9   :  { %414 = vrsqrt.f32 %v122_v45 }
  0xca   :  { %356 = vmatpush3.bf16.xpose.msra.mxu0 %v353_v19  ;;  %416 = vrsqrt.f32 %v121_v47 }
  0xcb   :  { %358 = vmatprep.subr.bf16.mxu0 %v357_v36  ;;  %418 = vrsqrt.f32 %v54_v56  ;;  %v261_v0 = vpop.permute.xlu0 %260 }
  0xcc   :  { %vm265_vm1 = vcmp.eq.s32.totalorder %v253_v7, %v261_v0 }
  0xd0   :  { %v409_v44 = vpop.eup %408 }
  0xd1   :  { %v57_v46 = vmul.f32 %v409_v44, %v575_v32  ;;  %v411_v16 = vpop.eup %410 }
  0xd2   :  { %360 = vmatpush3.bf16.xpose.msra.mxu0 %v357_v36  ;;  %v413_v50 = vpop.eup %412  ;;  %v152_v52 = vmul.f32 %v411_v16, %v556_v24 }
  0xd3   :  { %362 = vmatprep.subr.bf16.mxu0 %v361_v43  ;;  %342 = vmatprep.mubr.f32.mxu0 %v57_v46  ;;  %v151_v51 = vmul.f32 %v413_v50, %v558_v25  ;;  %v415_v32 = vpop.eup %414 }
  0xd4   :  { %v417_v54 = vpop.eup %416  ;;  %v154_v21 = vmul.f32 %v415_v32, %v564_v28 }
  0xd5   :  { %v369_v53 = vpack.c.bf16 %v152_v52, %v151_v51  ;;  %v153_v20 = vmul.f32 %v417_v54, %v566_v29  ;;  %v419_v58 = vpop.eup %418 }
  0xd6   :  { %v58_v25 = vmul.f32 %v419_v58, %v580_v33 }
  0xd7   :  { %v373_v57 = vpack.c.bf16 %v154_v21, %v153_v20 }
  0xda   :  { %364 = vmatpush3.bf16.xpose.msra.mxu0 %v361_v43 }
  0xdb   :  { %366 = vmatprep.subr.bf16.mxu0 %v365_v17 }
  0xe2   :  { %368 = vmatpush3.bf16.xpose.msra.mxu0 %v365_v17 }
  0xe3   :  { %370 = vmatprep.subr.bf16.mxu0 %v369_v53 }
  0xea   :  { %372 = vmatpush3.bf16.xpose.msra.mxu0 %v369_v53 }
  0xeb   :  { %374 = vmatprep.subr.bf16.mxu0 %v373_v57 }
  0xf2   :  { %376 = vmatpush3.bf16.xpose.msra.mxu0 %v373_v57 }
  0xf9   :  { %343 = vmatmul.mubr.f32.vlgmr.msra.gmra.mrb[0].mxu0 %v58_v25 }
 0x1cc   :  { %v344_v24 = vpop.f32.mrb[0].mxu0 }
 0x1cd   :  { %v231_v60 = vsub.f32 0.0, %v344_v24  ;;  %v237_v61 = vadd.f32 0.25, %v344_v24  ;;  %v221_v62 = vpop.f32.mrb[1].mxu0  ;;  %v289_v2 = vadd.f32 -0.75, %v344_v24  ;;  %v291_v18 = vadd.f32 -0.25, %v344_v24 }
 0x1ce   :  { %v230_v63 = vsub.f32 0.0, %v221_v62  ;;  %v236_v3 = vadd.f32 0.25, %v221_v62  ;;  %v288_v19 = vadd.f32 -0.75, %v221_v62  ;;  %v290_v22 = vadd.f32 -0.25, %v221_v62 }
 0x1cf   :  { %v233_v29 = vadd.f32 1.25, %v231_v60  ;;  %v239_v4 = vmax.f32 %v237_v61, 0.0 }
 0x1d0   :  { %v232_v28 = vadd.f32 1.25, %v230_v63  ;;  %v238_v6 = vmax.f32 %v236_v3, 0.0 }
 0x1d1   :  { %v235_v10 = vmax.f32 %v233_v29, 0.0  ;;  %v247_v11 = vmul.f32 128.0, %v239_v4 }
 0x1d2   :  { %v234_v15 = vmax.f32 %v232_v28, 0.0  ;;  %v246_v1 = vmul.f32 128.0, %v238_v6 }
 0x1d3   :  { %v241_v33 = vmul.f32 128.0, %v235_v10  ;;  %v251_v26 = vmul.f32 %v291_v18, %v247_v11 }
 0x1d4   :  { %v240_v5 = vmul.f32 128.0, %v234_v15  ;;  %v250_v30 = vmul.f32 %v290_v22, %v246_v1 }
 0x1d5   :  { %v245_v23 = vmul.f32 %v289_v2, %v241_v33 }
 0x1d6   :  { %v244_v27 = vmul.f32 %v288_v19, %v240_v5 }
 0x1d7   :  { %v268_v31 = vsel %vm266_vm0, %v245_v23, %v251_v26 }
 0x1d8   :  { %270 = vst [vmem:[#allocation5 + $0x8] sm:$0xff] %v268_v31  ;;  %v267_v34 = vsel %vm265_vm1, %v244_v27, %v250_v30 }
 0x1d9   :  { %269 = vst [vmem:[#allocation5] sm:$0xff] %v267_v34 }
 0x1da   :  { %453 = shalt.err (!%p450_p12)
}
 0x1db   :  { %s454_s9 = scalar_lea.hbm %s628_s3, 256 }
 0x1dc   :  { %p455_p13 = scmp.ne.s32.totalorder %s628_s3, %s454_s9  ;;  %p458_p0 = scmp.lt.u32.totalorder %s454_s9, %s628_s3 }
 0x1de   :  { %p460_p1 = pnand %p458_p0, %p455_p13 }
 0x1e0   :  { %463 = shalt.err (!%p460_p1)
}
 0x1e1   :  { %282 = dma.vmem_to_hbm [thread:$0]  %s277_s2, 256, %s628_s3, [#allocation4], %s469_s22, %s469_s22, %s470_s23  }
 0x1e2   :  { %466 = dma.done.wait [#allocation4], 256  }
 0x1e3   :  { %467 = vsyncadd [#allocation4], 4294967040 }
 0x1e4   :  { %286 = vsyncpa [#allocation3], 1 }
 0x1e5   :  { %287 = vsyncpa [#allocation4], 1 }

</bundles_post_ra>
